<compile_context>
chip_gen: v7x
topology: tpu7x:2x2x1
jax: 0.10.0
libtpu: 0.0.40
codegen_flags: <defaults>
</compile_context>

<pallas_src>
import functools

import jax
import jax.numpy as jnp
from jax.experimental import pallas as pl
from jax.experimental.pallas import tpu as pltpu


def _round_up(x, m):
    return (x + m - 1) // m * m


def _cdiv(a, b):
    return (a + b - 1) // b


def _vmem_capacity_bytes():
    try:
        return int(pltpu.get_tpu_info().vmem_capacity_bytes)
    except Exception:
        return 64 << 20          # v7x per-TC capacity: the safe lower bound


def _choose_bm(M, bm_req, mxu_align=256, min_align=16):
    """MXU-aligned row tile; prefer a divisor of M (no padded x copy) and
    >= 2 tiles so both v7x TensorCores get work on the 'parallel' axis."""
    if M <= mxu_align:
        return _round_up(M, min_align)
    bm = min(_round_up(bm_req, mxu_align), _round_up(M, mxu_align))

    def prefer_divisor(b):
        for cand in range(b, mxu_align - 1, -mxu_align):
            if M % cand == 0:
                return cand
        return b

    bm = prefer_divisor(bm)
    if _cdiv(M, bm) < 2 and bm > mxu_align:      # megacore: give TC1 a tile
        bm = prefer_divisor(max(mxu_align, _round_up(bm // 2, mxu_align)))
    return bm


# ---------------------------------------------------------------------------
# Kernels
# ---------------------------------------------------------------------------
def ffn_kernel_resident(x_ref, w1_ref, b1_ref, w2_ref, b2_ref, o_ref, *,
                        approximate_gelu):
    # x_ref: (bm, C) input-dtype row tile.  W1/W2 are VMEM-resident bf16
    # (constant block index -> DMA'd once).  Biases f32.  No scratch needed.
    xb = x_ref[...].astype(w1_ref.dtype)                  # cast in-kernel
    h = jnp.dot(xb, w1_ref[...], preferred_element_type=jnp.float32)
    h = jax.nn.gelu(h + b1_ref[...], approximate=approximate_gelu)
    o_ref[...] = (jnp.dot(h.astype(w2_ref.dtype), w2_ref[...],
                          preferred_element_type=jnp.float32)
                  + b2_ref[...]).astype(o_ref.dtype)


def ffn_kernel_split_k(x_ref, w1_ref, b1_ref, w2_ref, b2_ref, o_ref, acc_ref,
                       *, approximate_gelu):
    # Hidden dim streamed in tk slices (grid axis 1, innermost); partial
    # products accumulate into an f32 VMEM scratch resident across k.
    k = pl.program_id(1)

    @pl.when(k == 0)
    def _():
        acc_ref[...] = jnp.zeros_like(acc_ref)

    xb = x_ref[...].astype(w1_ref.dtype)
    h = jnp.dot(xb, w1_ref[...], preferred_element_type=jnp.float32)
    h = jax.nn.gelu(h + b1_ref[...], approximate=approximate_gelu)
    acc_ref[...] += jnp.dot(h.astype(w2_ref.dtype), w2_ref[...],
                            preferred_element_type=jnp.float32)

    @pl.when(k == pl.num_programs(1) - 1)
    def _():
        o_ref[...] = (acc_ref[...] + b2_ref[...]).astype(o_ref.dtype)


# ---------------------------------------------------------------------------
# Wrappers
# ---------------------------------------------------------------------------
def prepare_ffn_params(w1, b1, w2, b2, *, compute_dtype=jnp.bfloat16):
    """Cast/reshape the weights ONCE, outside the per-forward hot path."""
    C, H = w1.shape
    return {
        "w1": w1.astype(compute_dtype),
        "b1": b1.reshape(1, H).astype(jnp.float32),
        "w2": w2.astype(compute_dtype),
        "b2": b2.reshape(1, C).astype(jnp.float32),
    }


def feed_forward(x, params, *, bm=512, approximate_gelu=True):
    """x: [B, T, C] -> [B, T, C]; eval-mode forward of the PyTorch module."""
    B, T, C = x.shape
    w1, b1, w2, b2 = params["w1"], params["b1"], params["w2"], params["b2"]
    H = w1.shape[1]
    M = B * T

    cb = jnp.dtype(w1.dtype).itemsize        # compute-operand bytes (bf16: 2)
    xbytes = jnp.dtype(x.dtype).itemsize
    obytes = xbytes                           # output in the input dtype

    vmem_cap = _vmem_capacity_bytes()
    budget = int(0.80 * vmem_cap)
    headroom = 2 << 20

    bm = _choose_bm(M, bm)

    def resident_bytes(bm_):
        return (2 * 2 * C * H * cb                 # W1/W2 (double-buffer-safe)
                + 2 * (H + C) * 4                  # biases
                + 2 * bm_ * C * (xbytes + obytes)  # x/out tiles, dbl-buffered
                + bm_ * H * (4 + cb)               # f32 + bf16 hidden temp
                + headroom)

    def splitk_bytes(bm_, tk_):
        return (2 * 2 * C * tk_ * cb               # W1/W2 slices, dbl-buffered
                + 2 * (tk_ + C) * 4                # biases
                + 2 * bm_ * C * (xbytes + obytes)  # x/out tiles
                + bm_ * C * 4                      # f32 accumulator scratch
                + bm_ * tk_ * (4 + cb)             # hidden temp
                + headroom)

    resident = resident_bytes(bm) <= budget
    if not resident:
        # shrink bm until even a 128-wide hidden slice fits the budget
        while bm > 256 and splitk_bytes(bm, 128) > budget:
            bm = max(256, _round_up(bm // 2, 256))

    Mp = _round_up(M, bm)
    x2d = x.reshape(M, C)
    if Mp != M:
        # TODO(synk): handle the ragged last row tile in-kernel instead of a
        # padded copy (only hit when no MXU-aligned divisor of M exists).
        x2d = jnp.pad(x2d, ((0, Mp - M), (0, 0)))

    if resident:
        kernel = functools.partial(ffn_kernel_resident,
                                   approximate_gelu=approximate_gelu)
        vmem_limit = int(min(max(resident_bytes(bm), 16 << 20),
                             int(0.85 * vmem_cap)))
        out2d = pl.pallas_call(
            kernel,
            out_shape=jax.ShapeDtypeStruct((Mp, C), x.dtype),
            grid_spec=pltpu.PrefetchScalarGridSpec(
                num_scalar_prefetch=0,
                grid=(Mp // bm,),
                in_specs=[
                    pl.BlockSpec((bm, C), lambda i: (i, 0)),   # x row tile
                    pl.BlockSpec((C, H), lambda i: (0, 0)),    # W1 (resident)
                    pl.BlockSpec((1, H), lambda i: (0, 0)),    # b1
                    pl.BlockSpec((H, C), lambda i: (0, 0)),    # W2 (resident)
                    pl.BlockSpec((1, C), lambda i: (0, 0)),    # b2
                ],
                out_specs=pl.BlockSpec((bm, C), lambda i: (i, 0)),
            ),
            compiler_params=pltpu.CompilerParams(
                dimension_semantics=("parallel",),
                vmem_limit_bytes=vmem_limit,
            ),
        )(x2d, w1, b1, w2, b2)
        return out2d[:M].reshape(B, T, C)

    # ---- split-k path: stream W1/W2 hidden slices, f32 accumulator --------
    Hp = _round_up(H, 128)
    if Hp != H:
        # TODO(synk): move this (rare) hidden-dim pad into prepare_ffn_params.
        w1 = jnp.pad(w1, ((0, 0), (0, Hp - H)))
        b1 = jnp.pad(b1, ((0, 0), (0, Hp - H)))
        w2 = jnp.pad(w2, ((0, Hp - H), (0, 0)))

    tk = 128
    for cand in range(128, Hp + 1, 128):       # largest fitting divisor of Hp
        if Hp % cand == 0 and splitk_bytes(bm, cand) <= budget:
            tk = max(tk, cand)

    kernel = functools.partial(ffn_kernel_split_k,
                               approximate_gelu=approximate_gelu)
    vmem_limit = int(min(max(splitk_bytes(bm, tk), 16 << 20),
                         int(0.85 * vmem_cap)))
    out2d = pl.pallas_call(
        kernel,
        out_shape=jax.ShapeDtypeStruct((Mp, C), x.dtype),
        grid_spec=pltpu.PrefetchScalarGridSpec(
            num_scalar_prefetch=0,
            grid=(Mp // bm, Hp // tk),           # (rows, hidden reduction)
            in_specs=[
                pl.BlockSpec((bm, C), lambda i, k: (i, 0)),    # x row tile
                pl.BlockSpec((C, tk), lambda i, k: (0, k)),    # W1 hidden slice
                pl.BlockSpec((1, tk), lambda i, k: (0, k)),    # b1 hidden slice
                pl.BlockSpec((tk, C), lambda i, k: (k, 0)),    # W2 hidden slice
                pl.BlockSpec((1, C), lambda i, k: (0, 0)),     # b2
            ],
            out_specs=pl.BlockSpec((bm, C), lambda i, k: (i, 0)),
            scratch_shapes=[pltpu.VMEM((bm, C), jnp.float32)],
        ),
        compiler_params=pltpu.CompilerParams(
            dimension_semantics=("parallel", "arbitrary"),
            vmem_limit_bytes=vmem_limit,
        ),
    )(x2d, w1, b1, w2, b2)
    return out2d[:M].reshape(B, T, C)


def _reference(x2d, w1, b1, w2, b2):
    # Eval-mode PyTorch math in f32 (exact erf GELU, dropout = identity).
    h = jax.nn.gelu(x2d @ w1 + b1.reshape(1, -1), approximate=False)
    return h @ w2 + b2.reshape(1, -1)


if __name__ == "__main__":
    # Small shapes consistent with the module: n_embd=32, hidden=4*32=128.
    B, T, C = 2, 8, 32
    H = 4 * C

    key = jax.random.PRNGKey(0)
    kx, kw1, kb1, kw2, kb2 = jax.random.split(key, 5)

    x = jax.random.normal(kx, (B, T, C), dtype=jnp.float32)
    # Deterministic "PyTorch-like" init (uniform in +-1/sqrt(fan_in)).
    w1 = jax.random.uniform(kw1, (C, H), jnp.float32, -1.0, 1.0) / jnp.sqrt(C)
    b1 = jax.random.uniform(kb1, (1, H), jnp.float32, -1.0, 1.0) / jnp.sqrt(C)
    w2 = jax.random.uniform(kw2, (H, C), jnp.float32, -1.0, 1.0) / jnp.sqrt(H)
    b2 = jax.random.uniform(kb2, (1, C), jnp.float32, -1.0, 1.0) / jnp.sqrt(H)

    # Weight cast/reshape happens once, outside the per-forward hot path.
    params = prepare_ffn_params(w1, b1, w2, b2)

    out = feed_forward(x, params)
    jax.block_until_ready(out)

    ref = _reference(x.reshape(B * T, C), w1, b1, w2, b2).reshape(B, T, C)
    assert out.shape == (B, T, C)
    # bf16 MXU operands + tanh-GELU vs the f32 erf-GELU reference: loose tol.
    err = float(jnp.max(jnp.abs(out - ref)))
    assert err < 5e-2, f"mismatch vs reference: max abs err = {err}"

    print("KERNEL_OK")
</pallas_src>

<mosaic_0001>
module attributes {stable_mosaic.version = 11 : i64} {
  func.func @ffn_kernel_resident(%arg0: i32, %arg1: memref<16x32xf32, #tpu.memory_space<vmem>>, %arg2: memref<32x128xbf16, #tpu.memory_space<vmem>>, %arg3: memref<1x128xf32, #tpu.memory_space<vmem>>, %arg4: memref<128x32xbf16, #tpu.memory_space<vmem>>, %arg5: memref<1x32xf32, #tpu.memory_space<vmem>>, %arg6: memref<16x32xf32, #tpu.memory_space<vmem>>) attributes {dimension_semantics = [#tpu.dimension_semantics<parallel>], iteration_bounds = array<i64: 1>, scalar_prefetch = 0 : i64, scratch_operands = 0 : i64, tpu.core_type = #tpu.core_type<tc>, window_params = [{transform_indices = @transform_0, window_bounds = array<i64: 16, 32>}, {pipeline_mode = #tpu.pipeline_mode<synchronous>, transform_indices = @transform_1, window_bounds = array<i64: 32, 128>}, {pipeline_mode = #tpu.pipeline_mode<synchronous>, transform_indices = @transform_2, window_bounds = array<i64: 1, 128>}, {pipeline_mode = #tpu.pipeline_mode<synchronous>, transform_indices = @transform_3, window_bounds = array<i64: 128, 32>}, {pipeline_mode = #tpu.pipeline_mode<synchronous>, transform_indices = @transform_4, window_bounds = array<i64: 1, 32>}, {transform_indices = @transform_5, window_bounds = array<i64: 16, 32>}]} {
    %c0 = arith.constant 0 : index
    %c0_0 = arith.constant 0 : index
    %0 = vector.load %arg1[%c0, %c0_0] : memref<16x32xf32, #tpu.memory_space<vmem>>, vector<16x32xf32>
    %1 = arith.truncf %0 : vector<16x32xf32> to vector<16x32xbf16>
    %c0_1 = arith.constant 0 : index
    %c0_2 = arith.constant 0 : index
    %2 = vector.load %arg2[%c0_1, %c0_2] : memref<32x128xbf16, #tpu.memory_space<vmem>>, vector<32x128xbf16>
    %cst = arith.constant dense<0.000000e+00> : vector<16x128xf32>
    %3 = tpu.matmul %1, %2, %cst {dimension_numbers = #tpu.dot_dimension_numbers<[1], [0], [0], [1], [0, 0, 1, 1], [], []>} : vector<16x32xbf16>, vector<32x128xbf16>, vector<16x128xf32> -> vector<16x128xf32>
    %c0_3 = arith.constant 0 : index
    %c0_4 = arith.constant 0 : index
    %4 = vector.load %arg3[%c0_3, %c0_4] : memref<1x128xf32, #tpu.memory_space<vmem>>, vector<1x128xf32>
    %5 = vector.broadcast %4 : vector<1x128xf32> to vector<16x128xf32>
    %6 = arith.addf %3, %5 : vector<16x128xf32>
    %7 = arith.mulf %6, %6 : vector<16x128xf32>
    %8 = arith.mulf %6, %7 : vector<16x128xf32>
    %cst_5 = arith.constant 4.471500e-02 : f32
    %9 = vector.broadcast %cst_5 : f32 to vector<16x128xf32>
    %10 = arith.mulf %9, %8 : vector<16x128xf32>
    %11 = arith.addf %6, %10 : vector<16x128xf32>
    %cst_6 = arith.constant 0.797884583 : f32
    %12 = vector.broadcast %cst_6 : f32 to vector<16x128xf32>
    %13 = arith.mulf %12, %11 : vector<16x128xf32>
    %14 = math.tanh %13 : vector<16x128xf32>
    %cst_7 = arith.constant 1.000000e+00 : f32
    %15 = vector.broadcast %cst_7 : f32 to vector<16x128xf32>
    %16 = arith.addf %15, %14 : vector<16x128xf32>
    %cst_8 = arith.constant 5.000000e-01 : f32
    %17 = vector.broadcast %cst_8 : f32 to vector<16x128xf32>
    %18 = arith.mulf %17, %16 : vector<16x128xf32>
    %19 = arith.mulf %6, %18 : vector<16x128xf32>
    %20 = arith.truncf %19 : vector<16x128xf32> to vector<16x128xbf16>
    %c0_9 = arith.constant 0 : index
    %c0_10 = arith.constant 0 : index
    %21 = vector.load %arg4[%c0_9, %c0_10] : memref<128x32xbf16, #tpu.memory_space<vmem>>, vector<128x32xbf16>
    %cst_11 = arith.constant dense<0.000000e+00> : vector<16x32xf32>
    %22 = tpu.matmul %20, %21, %cst_11 {dimension_numbers = #tpu.dot_dimension_numbers<[1], [0], [0], [1], [0, 0, 1, 1], [], []>} : vector<16x128xbf16>, vector<128x32xbf16>, vector<16x32xf32> -> vector<16x32xf32>
    %c0_12 = arith.constant 0 : index
    %c0_13 = arith.constant 0 : index
    %23 = vector.load %arg5[%c0_12, %c0_13] : memref<1x32xf32, #tpu.memory_space<vmem>>, vector<1x32xf32>
    %24 = vector.broadcast %23 : vector<1x32xf32> to vector<16x32xf32>
    %25 = arith.addf %22, %24 : vector<16x32xf32>
    %c0_14 = arith.constant 0 : index
    %c0_15 = arith.constant 0 : index
    %26 = vector.load %arg6[%c0_14, %c0_15] : memref<16x32xf32, #tpu.memory_space<vmem>>, vector<16x32xf32>
    tpu.vector_store %arg6[%c0_14, %c0_15], %25 {strides = array<i32>} : memref<16x32xf32, #tpu.memory_space<vmem>>, vector<16x32xf32>,
    return
  }
  func.func @transform_0(%arg0: i32) -> (i32, i32) {
    %c0_i32 = arith.constant 0 : i32
    %c0_i32_0 = arith.constant 0 : i32
    return %arg0, %c0_i32 : i32, i32
  }
  func.func @transform_1(%arg0: i32) -> (i32, i32) {
    %c0_i32 = arith.constant 0 : i32
    %c0_i32_0 = arith.constant 0 : i32
    %c0_i32_1 = arith.constant 0 : i32
    return %c0_i32, %c0_i32_0 : i32, i32
  }
  func.func @transform_2(%arg0: i32) -> (i32, i32) {
    %c0_i32 = arith.constant 0 : i32
    %c0_i32_0 = arith.constant 0 : i32
    %c0_i32_1 = arith.constant 0 : i32
    return %c0_i32, %c0_i32_0 : i32, i32
  }
  func.func @transform_3(%arg0: i32) -> (i32, i32) {
    %c0_i32 = arith.constant 0 : i32
    %c0_i32_0 = arith.constant 0 : i32
    %c0_i32_1 = arith.constant 0 : i32
    return %c0_i32, %c0_i32_0 : i32, i32
  }
  func.func @transform_4(%arg0: i32) -> (i32, i32) {
    %c0_i32 = arith.constant 0 : i32
    %c0_i32_0 = arith.constant 0 : i32
    %c0_i32_1 = arith.constant 0 : i32
    return %c0_i32, %c0_i32_0 : i32, i32
  }
  func.func @transform_5(%arg0: i32) -> (i32, i32) {
    %c0_i32 = arith.constant 0 : i32
    %c0_i32_0 = arith.constant 0 : i32
    return %arg0, %c0_i32 : i32, i32
  }
}

</mosaic_0001>

<bundles_post_ra>
// kernel: tpu_custom_call.1
= control target key start
LH: loop header
LB: loop body
LE: loop exit
PB: predicated region body
PF: predicated region fallthrough
CT: control target
= control target key end

     0   :  { %v338_v1 = vmov 0.0   ;;  %vm339_vm0 = vmmov 0   ;;  %vm48_vm1 = vcmask 261120   ;;  %s430_s0 = inlined_call_operand.vmem [shape: f32[16,32], index: 0, kind: input, shape index: {}]   ;;  %s431_s1 = inlined_call_operand.vmem [shape: bf16[32,128], index: 1, kind: input, shape index: {}]   ;;  %s432_s2 = inlined_call_operand.vmem [shape: f32[1,128], index: 2, kind: input, shape index: {}]   ;;  %s433_s3 = inlined_call_operand.vmem [shape: bf16[128,32], index: 3, kind: input, shape index: {}]   ;;  %s434_s4 = inlined_call_operand.vmem [shape: f32[1,32], index: 4, kind: input, shape index: {}]   ;;  %s435_s5 = inlined_call_operand.hbm [shape: f32[16,32], index: 5, kind: output, shape index: {}]  }
   0x1   :  { %v300_v0 = vld [vmem:[%s431_s1] sm:$0xff]   ;;  %267 = vmatprep.subr.bf16.mxu0 %v338_v1  ;;  %275 = vmatprep.subr.bf16.mxu1 %v338_v1  ;;  %v301_v2 = vld [vmem:[%s431_s1 + $0x8] sm:$0xff]  }
   0x2   :  { %268 = vmatpush3.bf16.msra.mxu0 %v300_v0  ;;  %271 = vmatprep.mubr.msk.bf16.mxu0 %vm339_vm0, %v338_v1  ;;  %v22_v3 = vld [vmem:[%s430_s0] sm:$0xff]  ;;  %v23_v4 = vld [vmem:[%s430_s0 + $0x8] sm:$0xff] }
   0x3   :  { %269 = vmatprep.subr.bf16.mxu0 %v338_v1  ;;  %291 = vmatprep.mubr.msk.bf16.mxu1 %vm339_vm0, %v338_v1  ;;  %v24_v5 = vpack.c.bf16 %v23_v4, %v22_v3 }
   0x6   :  { %270 = vmatpush3.bf16.msra.mxu0 %v301_v2 }
   0x7   :  { %10 = vsyncpa [#allocation3], 0  ;;  %v302_v6 = vld [vmem:[%s433_s3] sm:$0xff]   ;;  %v303_v7 = vld [vmem:[%s433_s3 + $0x8] sm:$0xff]   ;;  %s340_s17 = smov [#allocation2]  }
   0x8   :  { %276 = vmatpush3.bf16.msra.mxu1 %v302_v6  ;;  %v304_v8 = vld [vmem:[%s433_s3 + $0x10] sm:$0xff]   ;;  %v305_v9 = vld [vmem:[%s433_s3 + $0x18] sm:$0xff]   ;;  %v306_v10 = vld [vmem:[%s433_s3 + $0x20] sm:$0xff]   ;;  %s231_s18 = sshll.u32 %s340_s17, 4  ;;  %s232_s18 = int_to_ptr.vmem [resolvable:$true] %s231_s18 }
   0x9   :  { %272 = vmatmul.mubr.msk.bf16.vlgmr.msra.gmra.mrb[0].mxu0 %vm48_vm1, %v24_v5  ;;  %277 = vmatprep.subr.bf16.mxu1 %v338_v1  ;;  %v307_v11 = vld [vmem:[%s433_s3 + $0x28] sm:$0xff]   ;;  %v308_v12 = vld [vmem:[%s433_s3 + $0x30] sm:$0xff]   ;;  %v309_v13 = vld [vmem:[%s433_s3 + $0x38] sm:$0xff]   ;;  %s314_s19 = scalar_lea.vmem %s232_s18, 256  ;;  %p319_p1 = scmp.lt.s32.totalorder %s232_s18, %s232_s18 }
   0xa   :  { %v242_v14 = vld [vmem:[%s432_s2] ss:$0 sm:$0xff]  ;;  %p315_p0 = scmp.ne.s32.totalorder %s232_s18, %s314_s19  ;;  %p320_p2 = scmp.lt.s32.totalorder %s314_s19, %s314_s19 }
   0xb   :  { %v246_v40 = vld [vmem:[%s434_s4] ss:$0 sm:$0xff] }
   0xc   :  { %278 = vmatpush3.bf16.msra.mxu1 %v303_v7  ;;  %p321_p3 = por %p320_p2, %p319_p1 }
   0xd   :  { %279 = vmatprep.subr.bf16.mxu1 %v338_v1 }
   0xe   :  { %p322_p4 = pnand %p321_p3, %p315_p0 }
  0x10   :  { %280 = vmatpush3.bf16.msra.mxu1 %v304_v8 }
  0x11   :  { %281 = vmatprep.subr.bf16.mxu1 %v338_v1 }
  0x14   :  { %282 = vmatpush3.bf16.msra.mxu1 %v305_v9 }
  0x15   :  { %283 = vmatprep.subr.bf16.mxu1 %v338_v1 }
  0x18   :  { %284 = vmatpush3.bf16.msra.mxu1 %v306_v10 }
  0x19   :  { %285 = vmatprep.subr.bf16.mxu1 %v338_v1 }
  0x1c   :  { %286 = vmatpush3.bf16.msra.mxu1 %v307_v11 }
  0x1d   :  { %287 = vmatprep.subr.bf16.mxu1 %v338_v1 }
  0x20   :  { %288 = vmatpush3.bf16.msra.mxu1 %v308_v12 }
  0x21   :  { %289 = vmatprep.subr.bf16.mxu1 %v338_v1 }
  0x24   :  { %290 = vmatpush3.bf16.msra.mxu1 %v309_v13 }
  0xdc   :  { %v86_v15 = vpop.f32.mrb[0].mxu0 }
  0xdd   :  { %v87_v16 = vadd.f32 %v242_v14, %v86_v15  ;;  %v273_v17 = vpop.f32.mrb[1].mxu0 }
  0xde   :  { %v89_v18 = vpop.f32.mrb[2].mxu0 }
  0xdf   :  { %v93_v19 = vmul.f32 %v87_v16, %v87_v16  ;;  %v90_v20 = vadd.f32 %v242_v14, %v89_v18  ;;  %v274_v21 = vpop.f32.mrb[3].mxu0 }
  0xe1   :  { %v95_v22 = vmul.f32 %v93_v19, %v87_v16  ;;  %v94_v23 = vmul.f32 %v90_v20, %v90_v20 }
  0xe3   :  { %v97_v24 = vmul.f32 0.044715, %v95_v22  ;;  %v96_v25 = vmul.f32 %v94_v23, %v90_v20 }
  0xe5   :  { %v99_v26 = vadd.f32 %v97_v24, %v87_v16  ;;  %v98_v27 = vmul.f32 0.044715, %v96_v25 }
  0xe7   :  { %v101_v28 = vmul.f32 0.7978846, %v99_v26  ;;  %v100_v29 = vadd.f32 %v98_v27, %v90_v20 }
  0xe9   :  { %310 = vtanh.f32 %v101_v28  ;;  %v102_v30 = vmul.f32 0.7978846, %v100_v29 }
  0xeb   :  { %312 = vtanh.f32 %v102_v30 }
  0xf3   :  { %v311_v31 = vpop.eup %310 }
  0xf4   :  { %v105_v32 = vadd.f32 1.0, %v311_v31 }
  0xf5   :  { %v313_v33 = vpop.eup %312 }
  0xf6   :  { %v106_v34 = vadd.f32 1.0, %v313_v33  ;;  %v107_v35 = vmul.f32 0.5, %v105_v32 }
  0xf8   :  { %v108_v36 = vmul.f32 0.5, %v106_v34  ;;  %v109_v37 = vmul.f32 %v107_v35, %v87_v16 }
  0xfa   :  { %v110_v38 = vmul.f32 %v108_v36, %v90_v20 }
  0xfc   :  { %v111_v39 = vpack.c.bf16 %v110_v38, %v109_v37 }
  0xfe   :  { %292 = vmatmul.mubr.bf16.vlgmr.msra.gmra.mrb[0].mxu1 %v111_v39 }
 0x1d1   :  { %v217_v41 = vpop.f32.mrb[0].mxu1 }
 0x1d2   :  { %v218_v42 = vadd.f32 %v246_v40, %v217_v41  ;;  %v293_v43 = vpop.f32.mrb[1].mxu1 }
 0x1d3   :  { %v220_v44 = vpop.f32.mrb[2].mxu1 }
 0x1d4   :  { %224 = vst.msk [vmem:[#allocation2] sm:$0xff] %vm48_vm1, %v218_v42  ;;  %v221_v45 = vadd.f32 %v246_v40, %v220_v44  ;;  %v294_v46 = vpop.f32.mrb[3].mxu1 }
 0x1d6   :  { %225 = vst.msk [vmem:[#allocation2 + $0x8] sm:$0xff] %vm48_vm1, %v221_v45 }
 0x1d7   :  { %325 = shalt.err (!%p322_p4)
}
 0x1d8   :  { %s326_s21 = scalar_lea.hbm %s435_s5, 256 }
 0x1d9   :  { %p327_p5 = scmp.ne.s32.totalorder %s435_s5, %s326_s21  ;;  %p330_p6 = scmp.lt.u32.totalorder %s326_s21, %s435_s5 }
 0x1db   :  { %p332_p7 = pnand %p330_p6, %p327_p5 }
 0x1dd   :  { %335 = shalt.err (!%p332_p7)
}
 0x1de   :  { %s341_s26 = smov 128   ;;  %s342_s1 = smov 8  }
 0x1df   :  { %237 = dma.vmem_to_hbm [thread:$0]  %s232_s18, 256, %s435_s5, [#allocation3], %s341_s26, %s341_s26, %s342_s1  }
 0x1e0   :  { %336 = dma.done.wait [#allocation3], 256  }
 0x1e1   :  { %337 = vsyncadd [#allocation3], 4294967040 }
 0x1e2   :  { %241 = vsyncpa [#allocation3], 1 }

</bundles_post_ra>
